<compile_context>
chip_gen: v6e
topology: v6e:2x2x1
jax: 0.10.0
libtpu: 0.0.40
codegen_flags: <defaults>
</compile_context>

<pallas_src>
import numpy as np

import jax
import jax.numpy as jnp
from jax import lax
from jax.experimental import pallas as pl
from jax.experimental.pallas import tpu as pltpu

# ----------------------------- config -----------------------------------
SCREEN_SIZE = 32
IN_CHANNELS = 4
NB_ACTIONS = 8
GOAL_DIM = 16
BATCH = 2

CONV1_K, CONV1_S, C1 = 8, 4, 16
CONV2_K, CONV2_S, C2 = 4, 2, 32
H1 = (SCREEN_SIZE - CONV1_K) // CONV1_S + 1          # 7
H2 = (H1 - CONV2_K) // CONV2_S + 1                   # 2
N_TAPS = CONV2_K * CONV2_K                           # 16
N_POS = H2 * H2                                      # 4
PATCH1_F = IN_CHANNELS * CONV1_K * CONV1_K           # 256  (lane aligned)
CONV_OUT_DIM = C2 * N_POS                            # 128
FC_DIM = 256
HEAD_PAD = 128                                       # >= NB_ACTIONS + 1, lane-dense


# ------------------------- fused Pallas kernel ---------------------------
def _fused_kernel(p1_ref, goal_ref, w1_ref, b1_ref, w2_ref, b2_ref,
                  wfcc_ref, wfcg_ref, bfc_ref, wh_ref, bh_ref,
                  out_ref, y1w_ref, y2s_ref, y2w_ref):
    """Entire forward pass; all intermediates stay in registers / VMEM scratch.

    p1_ref : [N_TAPS * N_POS * n, 256] bf16 conv1 patches pre-gathered in
             (tap, out-position, batch) row order.
    goal   : [n_pad, GOAL_DIM] bf16 (rows >= n are zero).
    out    : [n_pad, HEAD_PAD] f32; cols 0..7 = actor logits, col 8 = critic value.
    """
    rows1 = p1_ref.shape[0]
    blk = rows1 // N_TAPS                            # N_POS * n rows per conv2 tap
    n = blk // N_POS

    # conv1: ONE lane-dense [rows1,256] @ [256,16] MXU matmul (bf16 in, f32 acc).
    y1 = jnp.tanh(
        jnp.dot(p1_ref[...], w1_ref[...], preferred_element_type=jnp.float32)
        + b1_ref[...])                               # [rows1, 16] f32

    # Re-layout y1 [N_TAPS*blk, 16] -> [blk, N_TAPS*16 = 256] via a small VMEM
    # scratch: tap q is the sublane-aligned row block [q*blk,(q+1)*blk) and lands
    # in lane block [q*16,(q+1)*16).  (Avoids a lane-changing in-kernel reshape.)
    for q in range(N_TAPS):
        y1w_ref[:, q * C1:(q + 1) * C1] = y1[q * blk:(q + 1) * blk, :]

    # conv2: ONE [blk,256] @ [256,32] matmul with tap-major packed weights.
    y2 = jnp.tanh(
        jnp.dot(y1w_ref[...].astype(jnp.bfloat16), w2_ref[...],
                preferred_element_type=jnp.float32)
        + b2_ref[...])                               # [blk, 32] f32, rows (pos, batch)
    y2s_ref[...] = y2

    # Fold the NCHW flatten into a zero-padded [n_pad, 128] scratch so the fc
    # conv-part is one lane-dense matmul and the final store is 8-row aligned.
    y2w_ref[...] = jnp.zeros_like(y2w_ref)
    for p in range(N_POS):
        y2w_ref[0:n, p * C2:(p + 1) * C2] = y2s_ref[p * n:(p + 1) * n, :]

    # fc: one K=128 conv matmul + one K=16 goal matmul; bias + tanh in f32.
    h = (jnp.dot(y2w_ref[...].astype(jnp.bfloat16), wfcc_ref[...],
                 preferred_element_type=jnp.float32)
         + jnp.dot(goal_ref[...], wfcg_ref[...],
                   preferred_element_type=jnp.float32)
         + bfc_ref[...])
    h_fc = jnp.tanh(h)                               # [n_pad, 256] f32

    # merged actor|critic head: one matmul, unmasked lane-dense [n_pad,128] store.
    out_ref[...] = (
        jnp.dot(h_fc.astype(jnp.bfloat16), wh_ref[...],
                preferred_element_type=jnp.float32)
        + bh_ref[...])


# ------------------------------ glue -------------------------------------
def _conv2_gather_indices(n):
    """Row indices into the [n*H1*H1, 256] conv1-patch matrix, ordered
    (tap=(ki,kj), out-position=(oi,oj), batch)."""
    idx = []
    for ki in range(CONV2_K):
        for kj in range(CONV2_K):
            for p in range(N_POS):
                oi, oj = divmod(p, H2)
                s = (CONV2_S * oi + ki) * H1 + (CONV2_S * oj + kj)
                for b in range(n):
                    idx.append(b * H1 * H1 + s)
    return np.asarray(idx, dtype=np.int32)


def init_params(key):
    ks = jax.random.split(key, 10)
    scale = 0.05
    fc_in = CONV_OUT_DIM + GOAL_DIM
    return {
        "conv1_w": scale * jax.random.normal(ks[0], (C1, IN_CHANNELS, CONV1_K, CONV1_K), jnp.float32),
        "conv1_b": scale * jax.random.normal(ks[1], (C1,), jnp.float32),
        "conv2_w": scale * jax.random.normal(ks[2], (C2, C1, CONV2_K, CONV2_K), jnp.float32),
        "conv2_b": scale * jax.random.normal(ks[3], (C2,), jnp.float32),
        "fc_w": scale * jax.random.normal(ks[4], (fc_in, FC_DIM), jnp.float32),
        "fc_b": scale * jax.random.normal(ks[5], (FC_DIM,), jnp.float32),
        "actor_w": scale * jax.random.normal(ks[6], (FC_DIM, NB_ACTIONS), jnp.float32),
        "actor_b": scale * jax.random.normal(ks[7], (NB_ACTIONS,), jnp.float32),
        "critic_w": scale * jax.random.normal(ks[8], (FC_DIM, 1), jnp.float32),
        "critic_b": scale * jax.random.normal(ks[9], (1,), jnp.float32),
    }


def pack_params(params):
    """One-time weight packing (kept OUT of the jitted forward). Weights -> bf16,
    biases stay f32 (added post-accumulation)."""
    bf = jnp.bfloat16
    # conv1 weight -> [C*kh*kw, 16]; matches conv_general_dilated_patches' (C,kh,kw) order.
    w1m = params["conv1_w"].reshape(C1, -1).T.astype(bf)                   # [256, 16]
    b1 = params["conv1_b"][None, :].astype(jnp.float32)                    # [1, 16]

    # conv2 weight packed tap-major into ONE matrix: row q*16 + c1, col c2.
    w2p = jnp.transpose(params["conv2_w"], (2, 3, 1, 0)).reshape(
        N_TAPS * C1, C2).astype(bf)                                        # [256, 32]
    b2 = params["conv2_b"][None, :].astype(jnp.float32)                    # [1, 32]

    # fc conv-part packed so input column p*32 + c2 matches torch flatten m = c2*4 + p.
    fc_w = params["fc_w"]
    wfc_conv = fc_w[:CONV_OUT_DIM].reshape(C2, N_POS, FC_DIM).transpose(1, 0, 2).reshape(
        N_POS * C2, FC_DIM).astype(bf)                                     # [128, 256]
    wfc_goal = fc_w[CONV_OUT_DIM:].astype(bf)                              # [16, 256]
    bfc = params["fc_b"][None, :].astype(jnp.float32)                      # [1, 256]

    # merged + zero-padded actor|critic head -> lane-dense [256, 128].
    head_w = jnp.zeros((FC_DIM, HEAD_PAD), jnp.float32)
    head_w = head_w.at[:, :NB_ACTIONS].set(params["actor_w"])
    head_w = head_w.at[:, NB_ACTIONS:NB_ACTIONS + 1].set(params["critic_w"])
    head_b = jnp.zeros((1, HEAD_PAD), jnp.float32)
    head_b = head_b.at[0, :NB_ACTIONS].set(params["actor_b"])
    head_b = head_b.at[0, NB_ACTIONS].set(params["critic_b"][0])

    return dict(w1=w1m, b1=b1, w2=w2p, b2=b2, wfc_conv=wfc_conv,
                wfc_goal=wfc_goal, bfc=bfc, wh=head_w.astype(bf), bh=head_b)


def king_forward(packed, obs_features_nchw, controller_goal):
    """obs_features_nchw: [N, C, H, W] f32 ; controller_goal: [M, GOAL_DIM]."""
    n = obs_features_nchw.shape[0]
    npad = max(8, ((n + 7) // 8) * 8)                # 8-row padded head output
    blk = N_POS * n

    goal = controller_goal
    if goal.shape[0] != n:                           # torch .expand semantics
        goal = jnp.broadcast_to(goal, (n, goal.shape[-1]))
    goal_p = jnp.zeros((npad, GOAL_DIM), jnp.float32).at[:n, :].set(
        goal.astype(jnp.float32)).astype(jnp.bfloat16)

    # conv1 im2col: one XLA op. Feature order = (C, kh, kw), rows (n, oh, ow).
    patches = lax.conv_general_dilated_patches(
        obs_features_nchw, (CONV1_K, CONV1_K), (CONV1_S, CONV1_S), "VALID",
        dimension_numbers=("NCHW", "OIHW", "NCHW"))          # [N, 256, 7, 7]
    pt = jnp.transpose(patches, (0, 2, 3, 1)).reshape(n * H1 * H1, PATCH1_F)

    # Static row-gather into (tap, position, batch) order + bf16 cast (fused).
    p1 = jnp.take(pt, jnp.asarray(_conv2_gather_indices(n)), axis=0
                  ).astype(jnp.bfloat16)                      # [64n, 256] bf16

    rows1 = N_TAPS * N_POS * n
    flops = 2 * (rows1 * PATCH1_F * C1
                 + blk * (N_TAPS * C1) * C2
                 + npad * CONV_OUT_DIM * FC_DIM
                 + npad * GOAL_DIM * FC_DIM
                 + npad * FC_DIM * HEAD_PAD)
    transcendentals = rows1 * C1 + blk * C2 + npad * FC_DIM
    bytes_accessed = (2 * (rows1 * PATCH1_F + npad * GOAL_DIM
                           + PATCH1_F * C1 + N_TAPS * C1 * C2
                           + CONV_OUT_DIM * FC_DIM + GOAL_DIM * FC_DIM
                           + FC_DIM * HEAD_PAD)
                      + 4 * (C1 + C2 + FC_DIM + HEAD_PAD + npad * HEAD_PAD))

    vmem = pl.BlockSpec(memory_space=pltpu.MemorySpace.VMEM)
    out = pl.pallas_call(
        _fused_kernel,
        out_shape=jax.ShapeDtypeStruct((npad, HEAD_PAD), jnp.float32),
        in_specs=[vmem] * 11,
        out_specs=vmem,
        scratch_shapes=[
            pltpu.VMEM((blk, N_TAPS * C1), jnp.float32),      # y1 re-layout [blk,256]
            pltpu.VMEM((blk, C2), jnp.float32),               # y2 staging   [blk,32]
            pltpu.VMEM((npad, CONV_OUT_DIM), jnp.float32),    # fc input     [npad,128]
        ],
        cost_estimate=pl.CostEstimate(flops=flops,
                                      transcendentals=transcendentals,
                                      bytes_accessed=bytes_accessed),
    )(p1, goal_p,
      packed["w1"], packed["b1"], packed["w2"], packed["b2"],
      packed["wfc_conv"], packed["wfc_goal"], packed["bfc"],
      packed["wh"], packed["bh"])

    logits = out[:n, :NB_ACTIONS]
    value = out[:n, NB_ACTIONS]
    return logits, value


king_actor_critic_forward = jax.jit(king_forward)


# -------------------- pure-JAX reference (for checking) ------------------
def reference_forward(params, obs, goal):
    dn = ("NCHW", "OIHW", "NCHW")
    hp = lax.Precision.HIGHEST
    y1 = jnp.tanh(lax.conv_general_dilated(obs, params["conv1_w"], (CONV1_S, CONV1_S),
                                           "VALID", dimension_numbers=dn, precision=hp)
                  + params["conv1_b"][None, :, None, None])
    y2 = jnp.tanh(lax.conv_general_dilated(y1, params["conv2_w"], (CONV2_S, CONV2_S),
                                           "VALID", dimension_numbers=dn, precision=hp)
                  + params["conv2_b"][None, :, None, None])
    h_conv = y2.reshape(y2.shape[0], -1)                 # torch.nn.Flatten (NCHW)
    g = goal
    if g.shape[0] != h_conv.shape[0]:
        g = jnp.broadcast_to(g, (h_conv.shape[0], g.shape[-1]))
    h_comb = jnp.concatenate([h_conv, g.astype(jnp.float32)], axis=-1)
    h_fc = jnp.tanh(h_comb @ params["fc_w"] + params["fc_b"])
    logits = h_fc @ params["actor_w"] + params["actor_b"]
    value = (h_fc @ params["critic_w"] + params["critic_b"])[:, 0]
    return logits, value


# ------------------------------ main -------------------------------------
if __name__ == "__main__":
    key = jax.random.PRNGKey(0)
    k_obs, k_goal, k_params = jax.random.split(key, 3)

    obs = jax.random.normal(
        k_obs, (BATCH, IN_CHANNELS, SCREEN_SIZE, SCREEN_SIZE), jnp.float32)
    goal = jax.random.normal(k_goal, (BATCH, GOAL_DIM), jnp.float32)
    params = init_params(k_params)
    packed = pack_params(params)        # one-time packing, outside the jit

    logits, value = king_actor_critic_forward(packed, obs, goal)
    jax.block_until_ready((logits, value))

    assert logits.shape == (BATCH, NB_ACTIONS), logits.shape
    assert value.shape == (BATCH,), value.shape
    assert logits.dtype == jnp.float32 and value.dtype == jnp.float32

    # correctness vs. a pure-JAX/XLA reference of the torch module
    ref_logits, ref_value = reference_forward(params, obs, goal)
    assert np.allclose(np.asarray(logits), np.asarray(ref_logits),
                       rtol=2e-2, atol=2e-2), "logits mismatch vs reference"
    assert np.allclose(np.asarray(value), np.asarray(ref_value),
                       rtol=2e-2, atol=2e-2), "value mismatch vs reference"

    print("KERNEL_OK")
</pallas_src>

<mosaic_0001>
module attributes {stable_mosaic.version = 11 : i64} {
  func.func @_fused_kernel(%arg0: memref<128x256xbf16, #tpu.memory_space<vmem>>, %arg1: memref<8x16xbf16, #tpu.memory_space<vmem>>, %arg2: memref<256x16xbf16, #tpu.memory_space<vmem>>, %arg3: memref<1x16xf32, #tpu.memory_space<vmem>>, %arg4: memref<256x32xbf16, #tpu.memory_space<vmem>>, %arg5: memref<1x32xf32, #tpu.memory_space<vmem>>, %arg6: memref<128x256xbf16, #tpu.memory_space<vmem>>, %arg7: memref<16x256xbf16, #tpu.memory_space<vmem>>, %arg8: memref<1x256xf32, #tpu.memory_space<vmem>>, %arg9: memref<256x128xbf16, #tpu.memory_space<vmem>>, %arg10: memref<1x128xf32, #tpu.memory_space<vmem>>, %arg11: memref<8x128xf32, #tpu.memory_space<vmem>>, %arg12: memref<8x256xf32, #tpu.memory_space<vmem>>, %arg13: memref<8x32xf32, #tpu.memory_space<vmem>>, %arg14: memref<8x128xf32, #tpu.memory_space<vmem>>) attributes {dimension_semantics = [], scalar_prefetch = 0 : i64, scratch_operands = 3 : i64, tpu.core_type = #tpu.core_type<tc>} {
    %c0 = arith.constant 0 : index
    %c0_0 = arith.constant 0 : index
    %0 = vector.load %arg0[%c0, %c0_0] : memref<128x256xbf16, #tpu.memory_space<vmem>>, vector<128x256xbf16>
    %c0_1 = arith.constant 0 : index
    %c0_2 = arith.constant 0 : index
    %1 = vector.load %arg2[%c0_1, %c0_2] : memref<256x16xbf16, #tpu.memory_space<vmem>>, vector<256x16xbf16>
    %cst = arith.constant dense<0.000000e+00> : vector<128x16xf32>
    %2 = tpu.matmul %0, %1, %cst {dimension_numbers = #tpu.dot_dimension_numbers<[1], [0], [0], [1], [0, 0, 1, 1], [], []>} : vector<128x256xbf16>, vector<256x16xbf16>, vector<128x16xf32> -> vector<128x16xf32>
    %c0_3 = arith.constant 0 : index
    %c0_4 = arith.constant 0 : index
    %3 = vector.load %arg3[%c0_3, %c0_4] : memref<1x16xf32, #tpu.memory_space<vmem>>, vector<1x16xf32>
    %4 = vector.broadcast %3 : vector<1x16xf32> to vector<128x16xf32>
    %5 = arith.addf %2, %4 : vector<128x16xf32>
    %6 = math.tanh %5 : vector<128x16xf32>
    %7 = vector.extract_strided_slice %6 {offsets = [0, 0], sizes = [8, 16], strides = [1, 1]} : vector<128x16xf32> to vector<8x16xf32>
    %c0_5 = arith.constant 0 : index
    %c0_6 = arith.constant 0 : index
    %8 = vector.load %arg12[%c0_5, %c0_6] : memref<8x256xf32, #tpu.memory_space<vmem>>, vector<8x16xf32>
    tpu.vector_store %arg12[%c0_5, %c0_6], %7 {strides = array<i32>} : memref<8x256xf32, #tpu.memory_space<vmem>>, vector<8x16xf32>,
    %9 = vector.extract_strided_slice %6 {offsets = [8, 0], sizes = [8, 16], strides = [1, 1]} : vector<128x16xf32> to vector<8x16xf32>
    %c0_7 = arith.constant 0 : index
    %c16 = arith.constant 16 : index
    %10 = vector.load %arg12[%c0_7, %c16] : memref<8x256xf32, #tpu.memory_space<vmem>>, vector<8x16xf32>
    tpu.vector_store %arg12[%c0_7, %c16], %9 {strides = array<i32>} : memref<8x256xf32, #tpu.memory_space<vmem>>, vector<8x16xf32>,
    %11 = vector.extract_strided_slice %6 {offsets = [16, 0], sizes = [8, 16], strides = [1, 1]} : vector<128x16xf32> to vector<8x16xf32>
    %c0_8 = arith.constant 0 : index
    %c32 = arith.constant 32 : index
    %12 = vector.load %arg12[%c0_8, %c32] : memref<8x256xf32, #tpu.memory_space<vmem>>, vector<8x16xf32>
    tpu.vector_store %arg12[%c0_8, %c32], %11 {strides = array<i32>} : memref<8x256xf32, #tpu.memory_space<vmem>>, vector<8x16xf32>,
    %13 = vector.extract_strided_slice %6 {offsets = [24, 0], sizes = [8, 16], strides = [1, 1]} : vector<128x16xf32> to vector<8x16xf32>
    %c0_9 = arith.constant 0 : index
    %c48 = arith.constant 48 : index
    %14 = vector.load %arg12[%c0_9, %c48] : memref<8x256xf32, #tpu.memory_space<vmem>>, vector<8x16xf32>
    tpu.vector_store %arg12[%c0_9, %c48], %13 {strides = array<i32>} : memref<8x256xf32, #tpu.memory_space<vmem>>, vector<8x16xf32>,
    %15 = vector.extract_strided_slice %6 {offsets = [32, 0], sizes = [8, 16], strides = [1, 1]} : vector<128x16xf32> to vector<8x16xf32>
    %c0_10 = arith.constant 0 : index
    %c64 = arith.constant 64 : index
    %16 = vector.load %arg12[%c0_10, %c64] : memref<8x256xf32, #tpu.memory_space<vmem>>, vector<8x16xf32>
    tpu.vector_store %arg12[%c0_10, %c64], %15 {strides = array<i32>} : memref<8x256xf32, #tpu.memory_space<vmem>>, vector<8x16xf32>,
    %17 = vector.extract_strided_slice %6 {offsets = [40, 0], sizes = [8, 16], strides = [1, 1]} : vector<128x16xf32> to vector<8x16xf32>
    %c0_11 = arith.constant 0 : index
    %c80 = arith.constant 80 : index
    %18 = vector.load %arg12[%c0_11, %c80] : memref<8x256xf32, #tpu.memory_space<vmem>>, vector<8x16xf32>
    tpu.vector_store %arg12[%c0_11, %c80], %17 {strides = array<i32>} : memref<8x256xf32, #tpu.memory_space<vmem>>, vector<8x16xf32>,
    %19 = vector.extract_strided_slice %6 {offsets = [48, 0], sizes = [8, 16], strides = [1, 1]} : vector<128x16xf32> to vector<8x16xf32>
    %c0_12 = arith.constant 0 : index
    %c96 = arith.constant 96 : index
    %20 = vector.load %arg12[%c0_12, %c96] : memref<8x256xf32, #tpu.memory_space<vmem>>, vector<8x16xf32>
    tpu.vector_store %arg12[%c0_12, %c96], %19 {strides = array<i32>} : memref<8x256xf32, #tpu.memory_space<vmem>>, vector<8x16xf32>,
    %21 = vector.extract_strided_slice %6 {offsets = [56, 0], sizes = [8, 16], strides = [1, 1]} : vector<128x16xf32> to vector<8x16xf32>
    %c0_13 = arith.constant 0 : index
    %c112 = arith.constant 112 : index
    %22 = vector.load %arg12[%c0_13, %c112] : memref<8x256xf32, #tpu.memory_space<vmem>>, vector<8x16xf32>
    tpu.vector_store %arg12[%c0_13, %c112], %21 {strides = array<i32>} : memref<8x256xf32, #tpu.memory_space<vmem>>, vector<8x16xf32>,
    %23 = vector.extract_strided_slice %6 {offsets = [64, 0], sizes = [8, 16], strides = [1, 1]} : vector<128x16xf32> to vector<8x16xf32>
    %c0_14 = arith.constant 0 : index
    %c128 = arith.constant 128 : index
    %24 = vector.load %arg12[%c0_14, %c128] : memref<8x256xf32, #tpu.memory_space<vmem>>, vector<8x16xf32>
    tpu.vector_store %arg12[%c0_14, %c128], %23 {strides = array<i32>} : memref<8x256xf32, #tpu.memory_space<vmem>>, vector<8x16xf32>,
    %25 = vector.extract_strided_slice %6 {offsets = [72, 0], sizes = [8, 16], strides = [1, 1]} : vector<128x16xf32> to vector<8x16xf32>
    %c0_15 = arith.constant 0 : index
    %c144 = arith.constant 144 : index
    %26 = vector.load %arg12[%c0_15, %c144] : memref<8x256xf32, #tpu.memory_space<vmem>>, vector<8x16xf32>
    tpu.vector_store %arg12[%c0_15, %c144], %25 {strides = array<i32>} : memref<8x256xf32, #tpu.memory_space<vmem>>, vector<8x16xf32>,
    %27 = vector.extract_strided_slice %6 {offsets = [80, 0], sizes = [8, 16], strides = [1, 1]} : vector<128x16xf32> to vector<8x16xf32>
    %c0_16 = arith.constant 0 : index
    %c160 = arith.constant 160 : index
    %28 = vector.load %arg12[%c0_16, %c160] : memref<8x256xf32, #tpu.memory_space<vmem>>, vector<8x16xf32>
    tpu.vector_store %arg12[%c0_16, %c160], %27 {strides = array<i32>} : memref<8x256xf32, #tpu.memory_space<vmem>>, vector<8x16xf32>,
    %29 = vector.extract_strided_slice %6 {offsets = [88, 0], sizes = [8, 16], strides = [1, 1]} : vector<128x16xf32> to vector<8x16xf32>
    %c0_17 = arith.constant 0 : index
    %c176 = arith.constant 176 : index
    %30 = vector.load %arg12[%c0_17, %c176] : memref<8x256xf32, #tpu.memory_space<vmem>>, vector<8x16xf32>
    tpu.vector_store %arg12[%c0_17, %c176], %29 {strides = array<i32>} : memref<8x256xf32, #tpu.memory_space<vmem>>, vector<8x16xf32>,
    %31 = vector.extract_strided_slice %6 {offsets = [96, 0], sizes = [8, 16], strides = [1, 1]} : vector<128x16xf32> to vector<8x16xf32>
    %c0_18 = arith.constant 0 : index
    %c192 = arith.constant 192 : index
    %32 = vector.load %arg12[%c0_18, %c192] : memref<8x256xf32, #tpu.memory_space<vmem>>, vector<8x16xf32>
    tpu.vector_store %arg12[%c0_18, %c192], %31 {strides = array<i32>} : memref<8x256xf32, #tpu.memory_space<vmem>>, vector<8x16xf32>,
    %33 = vector.extract_strided_slice %6 {offsets = [104, 0], sizes = [8, 16], strides = [1, 1]} : vector<128x16xf32> to vector<8x16xf32>
    %c0_19 = arith.constant 0 : index
    %c208 = arith.constant 208 : index
    %34 = vector.load %arg12[%c0_19, %c208] : memref<8x256xf32, #tpu.memory_space<vmem>>, vector<8x16xf32>
    tpu.vector_store %arg12[%c0_19, %c208], %33 {strides = array<i32>} : memref<8x256xf32, #tpu.memory_space<vmem>>, vector<8x16xf32>,
    %35 = vector.extract_strided_slice %6 {offsets = [112, 0], sizes = [8, 16], strides = [1, 1]} : vector<128x16xf32> to vector<8x16xf32>
    %c0_20 = arith.constant 0 : index
    %c224 = arith.constant 224 : index
    %36 = vector.load %arg12[%c0_20, %c224] : memref<8x256xf32, #tpu.memory_space<vmem>>, vector<8x16xf32>
    tpu.vector_store %arg12[%c0_20, %c224], %35 {strides = array<i32>} : memref<8x256xf32, #tpu.memory_space<vmem>>, vector<8x16xf32>,
    %37 = vector.extract_strided_slice %6 {offsets = [120, 0], sizes = [8, 16], strides = [1, 1]} : vector<128x16xf32> to vector<8x16xf32>
    %c0_21 = arith.constant 0 : index
    %c240 = arith.constant 240 : index
    %38 = vector.load %arg12[%c0_21, %c240] : memref<8x256xf32, #tpu.memory_space<vmem>>, vector<8x16xf32>
    tpu.vector_store %arg12[%c0_21, %c240], %37 {strides = array<i32>} : memref<8x256xf32, #tpu.memory_space<vmem>>, vector<8x16xf32>,
    %c0_22 = arith.constant 0 : index
    %c0_23 = arith.constant 0 : index
    %39 = vector.load %arg12[%c0_22, %c0_23] : memref<8x256xf32, #tpu.memory_space<vmem>>, vector<8x256xf32>
    %40 = arith.truncf %39 : vector<8x256xf32> to vector<8x256xbf16>
    %c0_24 = arith.constant 0 : index
    %c0_25 = arith.constant 0 : index
    %41 = vector.load %arg4[%c0_24, %c0_25] : memref<256x32xbf16, #tpu.memory_space<vmem>>, vector<256x32xbf16>
    %cst_26 = arith.constant dense<0.000000e+00> : vector<8x32xf32>
    %42 = tpu.matmul %40, %41, %cst_26 {dimension_numbers = #tpu.dot_dimension_numbers<[1], [0], [0], [1], [0, 0, 1, 1], [], []>} : vector<8x256xbf16>, vector<256x32xbf16>, vector<8x32xf32> -> vector<8x32xf32>
    %c0_27 = arith.constant 0 : index
    %c0_28 = arith.constant 0 : index
    %43 = vector.load %arg5[%c0_27, %c0_28] : memref<1x32xf32, #tpu.memory_space<vmem>>, vector<1x32xf32>
    %44 = vector.broadcast %43 : vector<1x32xf32> to vector<8x32xf32>
    %45 = arith.addf %42, %44 : vector<8x32xf32>
    %46 = math.tanh %45 : vector<8x32xf32>
    %c0_29 = arith.constant 0 : index
    %c0_30 = arith.constant 0 : index
    %47 = vector.load %arg13[%c0_29, %c0_30] : memref<8x32xf32, #tpu.memory_space<vmem>>, vector<8x32xf32>
    tpu.vector_store %arg13[%c0_29, %c0_30], %46 {strides = array<i32>} : memref<8x32xf32, #tpu.memory_space<vmem>>, vector<8x32xf32>,
    %cst_31 = arith.constant 0.000000e+00 : f32
    %48 = vector.broadcast %cst_31 : f32 to vector<8x128xf32>
    %c0_32 = arith.constant 0 : index
    %c0_33 = arith.constant 0 : index
    %49 = vector.load %arg14[%c0_32, %c0_33] : memref<8x128xf32, #tpu.memory_space<vmem>>, vector<8x128xf32>
    tpu.vector_store %arg14[%c0_32, %c0_33], %48 {strides = array<i32>} : memref<8x128xf32, #tpu.memory_space<vmem>>, vector<8x128xf32>,
    %c0_34 = arith.constant 0 : index
    %c0_35 = arith.constant 0 : index
    %50 = vector.load %arg13[%c0_34, %c0_35] : memref<8x32xf32, #tpu.memory_space<vmem>>, vector<2x32xf32>
    %c0_36 = arith.constant 0 : index
    %c0_37 = arith.constant 0 : index
    %51 = vector.load %arg14[%c0_36, %c0_37] : memref<8x128xf32, #tpu.memory_space<vmem>>, vector<2x32xf32>
    tpu.vector_store %arg14[%c0_36, %c0_37], %50 {strides = array<i32>} : memref<8x128xf32, #tpu.memory_space<vmem>>, vector<2x32xf32>,
    %c2 = arith.constant 2 : index
    %c0_38 = arith.constant 0 : index
    %52 = vector.load %arg13[%c2, %c0_38] : memref<8x32xf32, #tpu.memory_space<vmem>>, vector<2x32xf32>
    %c0_39 = arith.constant 0 : index
    %c32_40 = arith.constant 32 : index
    %53 = vector.load %arg14[%c0_39, %c32_40] : memref<8x128xf32, #tpu.memory_space<vmem>>, vector<2x32xf32>
    tpu.vector_store %arg14[%c0_39, %c32_40], %52 {strides = array<i32>} : memref<8x128xf32, #tpu.memory_space<vmem>>, vector<2x32xf32>,
    %c4 = arith.constant 4 : index
    %c0_41 = arith.constant 0 : index
    %54 = vector.load %arg13[%c4, %c0_41] : memref<8x32xf32, #tpu.memory_space<vmem>>, vector<2x32xf32>
    %c0_42 = arith.constant 0 : index
    %c64_43 = arith.constant 64 : index
    %55 = vector.load %arg14[%c0_42, %c64_43] : memref<8x128xf32, #tpu.memory_space<vmem>>, vector<2x32xf32>
    tpu.vector_store %arg14[%c0_42, %c64_43], %54 {strides = array<i32>} : memref<8x128xf32, #tpu.memory_space<vmem>>, vector<2x32xf32>,
    %c6 = arith.constant 6 : index
    %c0_44 = arith.constant 0 : index
    %56 = vector.load %arg13[%c6, %c0_44] : memref<8x32xf32, #tpu.memory_space<vmem>>, vector<2x32xf32>
    %c0_45 = arith.constant 0 : index
    %c96_46 = arith.constant 96 : index
    %57 = vector.load %arg14[%c0_45, %c96_46] : memref<8x128xf32, #tpu.memory_space<vmem>>, vector<2x32xf32>
    tpu.vector_store %arg14[%c0_45, %c96_46], %56 {strides = array<i32>} : memref<8x128xf32, #tpu.memory_space<vmem>>, vector<2x32xf32>,
    %c0_47 = arith.constant 0 : index
    %c0_48 = arith.constant 0 : index
    %58 = vector.load %arg14[%c0_47, %c0_48] : memref<8x128xf32, #tpu.memory_space<vmem>>, vector<8x128xf32>
    %59 = arith.truncf %58 : vector<8x128xf32> to vector<8x128xbf16>
    %c0_49 = arith.constant 0 : index
    %c0_50 = arith.constant 0 : index
    %60 = vector.load %arg6[%c0_49, %c0_50] : memref<128x256xbf16, #tpu.memory_space<vmem>>, vector<128x256xbf16>
    %cst_51 = arith.constant dense<0.000000e+00> : vector<8x256xf32>
    %61 = tpu.matmul %59, %60, %cst_51 {dimension_numbers = #tpu.dot_dimension_numbers<[1], [0], [0], [1], [0, 0, 1, 1], [], []>} : vector<8x128xbf16>, vector<128x256xbf16>, vector<8x256xf32> -> vector<8x256xf32>
    %c0_52 = arith.constant 0 : index
    %c0_53 = arith.constant 0 : index
    %62 = vector.load %arg1[%c0_52, %c0_53] : memref<8x16xbf16, #tpu.memory_space<vmem>>, vector<8x16xbf16>
    %c0_54 = arith.constant 0 : index
    %c0_55 = arith.constant 0 : index
    %63 = vector.load %arg7[%c0_54, %c0_55] : memref<16x256xbf16, #tpu.memory_space<vmem>>, vector<16x256xbf16>
    %cst_56 = arith.constant dense<0.000000e+00> : vector<8x256xf32>
    %64 = tpu.matmul %62, %63, %cst_56 {dimension_numbers = #tpu.dot_dimension_numbers<[1], [0], [0], [1], [0, 0, 1, 1], [], []>} : vector<8x16xbf16>, vector<16x256xbf16>, vector<8x256xf32> -> vector<8x256xf32>
    %65 = arith.addf %61, %64 : vector<8x256xf32>
    %c0_57 = arith.constant 0 : index
    %c0_58 = arith.constant 0 : index
    %66 = vector.load %arg8[%c0_57, %c0_58] : memref<1x256xf32, #tpu.memory_space<vmem>>, vector<1x256xf32>
    %67 = vector.broadcast %66 : vector<1x256xf32> to vector<8x256xf32>
    %68 = arith.addf %65, %67 : vector<8x256xf32>
    %69 = math.tanh %68 : vector<8x256xf32>
    %70 = arith.truncf %69 : vector<8x256xf32> to vector<8x256xbf16>
    %c0_59 = arith.constant 0 : index
    %c0_60 = arith.constant 0 : index
    %71 = vector.load %arg9[%c0_59, %c0_60] : memref<256x128xbf16, #tpu.memory_space<vmem>>, vector<256x128xbf16>
    %cst_61 = arith.constant dense<0.000000e+00> : vector<8x128xf32>
    %72 = tpu.matmul %70, %71, %cst_61 {dimension_numbers = #tpu.dot_dimension_numbers<[1], [0], [0], [1], [0, 0, 1, 1], [], []>} : vector<8x256xbf16>, vector<256x128xbf16>, vector<8x128xf32> -> vector<8x128xf32>
    %c0_62 = arith.constant 0 : index
    %c0_63 = arith.constant 0 : index
    %73 = vector.load %arg10[%c0_62, %c0_63] : memref<1x128xf32, #tpu.memory_space<vmem>>, vector<1x128xf32>
    %74 = vector.broadcast %73 : vector<1x128xf32> to vector<8x128xf32>
    %75 = arith.addf %72, %74 : vector<8x128xf32>
    %c0_64 = arith.constant 0 : index
    %c0_65 = arith.constant 0 : index
    %76 = vector.load %arg11[%c0_64, %c0_65] : memref<8x128xf32, #tpu.memory_space<vmem>>, vector<8x128xf32>
    tpu.vector_store %arg11[%c0_64, %c0_65], %75 {strides = array<i32>} : memref<8x128xf32, #tpu.memory_space<vmem>>, vector<8x128xf32>,
    return
  }
}

</mosaic_0001>

<bundles_post_ra>
// kernel: king_forward.1
= control target key start
LH: loop header
LB: loop body
LE: loop exit
PB: predicated region body
PF: predicated region fallthrough
CT: control target
= control target key end

     0   :  { %vm383_vm0 = vcmask 130048   ;;  %s1406_s24 = smov 48   ;;  %s1407_s25 = smov 64   ;;  %vm389_vm1 = vcmask 261248   ;;  %vm395_vm2 = vcmask 392448   ;;  %vm401_vm3 = vcmask 523648   ;;  %s1781_s2 = inlined_call_operand.vmem [shape: bf16[256,16], index: 2, kind: input, shape index: {}]   ;;  %s1782_s0 = inlined_call_operand.vmem [shape: bf16[128,256], index: 0, kind: input, shape index: {}]   ;;  %s1783_s3 = inlined_call_operand.vmem [shape: f32[1,16], index: 3, kind: input, shape index: {}]   ;;  %s1784_s4 = inlined_call_operand.vmem [shape: bf16[256,32], index: 4, kind: input, shape index: {}]   ;;  %s1785_s7 = inlined_call_operand.vmem [shape: bf16[16,256], index: 7, kind: input, shape index: {}]   ;;  %s1786_s6 = inlined_call_operand.vmem [shape: bf16[128,256], index: 6, kind: input, shape index: {}]   ;;  %s1787_s1 = inlined_call_operand.vmem [shape: bf16[8,16], index: 1, kind: input, shape index: {}]   ;;  %s1788_s5 = inlined_call_operand.vmem [shape: f32[1,32], index: 5, kind: input, shape index: {}]   ;;  %s1789_s9 = inlined_call_operand.vmem [shape: bf16[256,128], index: 9, kind: input, shape index: {}]   ;;  %s1790_s8 = inlined_call_operand.vmem [shape: f32[1,256], index: 8, kind: input, shape index: {}]   ;;  %s1791_s10 = inlined_call_operand.vmem [shape: f32[1,128], index: 10, kind: input, shape index: {}]   ;;  %s1792_s11 = inlined_call_operand.vmem [shape: f32[8,128], index: 11, kind: output, shape index: {}]  }
   0x1   :  { %v1267_v0 = vld [vmem:[%s1781_s2 + $0x78] sm:$0xff]   ;;  %v1269_v2 = vld [vmem:[%s1781_s2 + $0x70] sm:$0xff]   ;;  %v1271_v4 = vld [vmem:[%s1781_s2 + $0x68] sm:$0xff]   ;;  %s1408_s26 = smov 80   ;;  %s1409_s12 = smov 96   ;;  %vm407_vm4 = vcmask 654848  }
   0x2   :  { %v1268_v1 = vld [vmem:[%s1781_s2 + $0x38] sm:$0xff]   ;;  %1150 = vmatprep.subr.bf16.mxu0 %v1267_v0  ;;  %v1270_v3 = vld [vmem:[%s1781_s2 + $0x30] sm:$0xff]   ;;  %v1272_v5 = vld [vmem:[%s1781_s2 + $0x28] sm:$0xff]   ;;  %s1410_s19 = smov 112   ;;  %vm413_vm5 = vcmask 786048   ;;  %vm419_vm6 = vcmask 917248  }
   0x3   :  { %1151 = vmatpush3.bf16.msra.mxu0 %v1268_v1  ;;  %v1273_v6 = vld [vmem:[%s1781_s2 + $0x60] sm:$0xff]   ;;  %v1275_v8 = vld [vmem:[%s1781_s2 + $0x58] sm:$0xff]   ;;  %v1277_v10 = vld [vmem:[%s1781_s2 + $0x50] sm:$0xff]   ;;  %vm425_vm7 = vcmask 1048448   ;;  %vm643_vm8 = vcmask 261120   ;;  %vm647_vm9 = vcmask 254976  }
   0x4   :  { %1152 = vmatprep.subr.bf16.mxu0 %v1269_v2  ;;  %v1274_v7 = vld [vmem:[%s1781_s2 + $0x20] sm:$0xff]   ;;  %v1276_v9 = vld [vmem:[%s1781_s2 + $0x18] sm:$0xff]   ;;  %v1278_v12 = vld [vmem:[%s1781_s2 + $0x10] sm:$0xff]   ;;  %vm654_vm10 = vcmask 517376   ;;  %vm661_vm11 = vcmask 779776   ;;  %vm668_vm12 = vcmask 1042176  }
   0x5   :  { %v1285_v11 = vld [vmem:[%s1782_s0 + $0x4] ss:$8 sps:$4 sm:$0xff]   ;;  %v1283_v17 = vld [vmem:[%s1782_s0] ss:$8 sps:$4 sm:$0xff]   ;;  %v1286_v18 = vld [vmem:[%s1782_s0 + $0x14] ss:$8 sps:$4 sm:$0xff]  }
   0x6   :  { %302 = vmatprep.mubr.bf16.mxu0 %v1285_v11  ;;  %v1279_v13 = vld [vmem:[%s1781_s2 + $0x48] sm:$0xff]   ;;  %v1281_v15 = vld [vmem:[%s1781_s2 + $0x40] sm:$0xff]   ;;  %v1288_v19 = vld [vmem:[%s1782_s0 + $0x10] ss:$8 sps:$4 sm:$0xff]  }
   0x7   :  { %1153 = vmatpush3.bf16.msra.mxu0 %v1270_v3  ;;  %v1280_v14 = vld [vmem:[%s1781_s2 + $0x8] sm:$0xff]   ;;  %v1282_v16 = vld [vmem:[%s1781_s2] sm:$0xff]   ;;  %v1292_v22 = vld [vmem:[%s1782_s0 + $0x34] ss:$8 sps:$4 sm:$0xff]  }
   0x8   :  { %1154 = vmatprep.subr.bf16.mxu0 %v1271_v4  ;;  %v1289_v20 = vld [vmem:[%s1782_s0 + $0x24] ss:$8 sps:$4 sm:$0xff]   ;;  %v1291_v21 = vld [vmem:[%s1782_s0 + $0x20] ss:$8 sps:$4 sm:$0xff]   ;;  %v1294_v23 = vld [vmem:[%s1782_s0 + $0x30] ss:$8 sps:$4 sm:$0xff]  }
   0x9   :  { %v1295_v24 = vld [vmem:[%s1782_s0 + $0x44] ss:$8 sps:$4 sm:$0xff]   ;;  %v1297_v25 = vld [vmem:[%s1782_s0 + $0x40] ss:$8 sps:$4 sm:$0xff]   ;;  %v1298_v26 = vld [vmem:[%s1782_s0 + $0x54] ss:$8 sps:$4 sm:$0xff]  }
   0xa   :  { %v1300_v27 = vld [vmem:[%s1782_s0 + $0x50] ss:$8 sps:$4 sm:$0xff]   ;;  %v1301_v28 = vld [vmem:[%s1782_s0 + $0x64] ss:$8 sps:$4 sm:$0xff]   ;;  %v1303_v29 = vld [vmem:[%s1782_s0 + $0x60] ss:$8 sps:$4 sm:$0xff]  }
   0xb   :  { %1155 = vmatpush3.bf16.msra.mxu0 %v1272_v5  ;;  %v1304_v30 = vld [vmem:[%s1782_s0 + $0x74] ss:$8 sps:$4 sm:$0xff]   ;;  %v1306_v31 = vld [vmem:[%s1782_s0 + $0x70] ss:$8 sps:$4 sm:$0xff]   ;;  %v1572_v33 = vld [vmem:[%s1783_s3] ss:$0 sm:$0xff] }
   0xc   :  { %1156 = vmatprep.subr.bf16.mxu0 %v1273_v6  ;;  %s1404_s0 = smov 16   ;;  %s1405_s3 = smov 32  }
   0xf   :  { %1157 = vmatpush3.bf16.msra.mxu0 %v1274_v7 }
  0x10   :  { %1158 = vmatprep.subr.bf16.mxu0 %v1275_v8 }
  0x13   :  { %1159 = vmatpush3.bf16.msra.mxu0 %v1276_v9 }
  0x14   :  { %1160 = vmatprep.subr.bf16.mxu0 %v1277_v10 }
  0x17   :  { %1161 = vmatpush3.bf16.msra.mxu0 %v1278_v12 }
  0x18   :  { %1162 = vmatprep.subr.bf16.mxu0 %v1279_v13 }
  0x1b   :  { %1163 = vmatpush3.bf16.msra.mxu0 %v1280_v14 }
  0x1c   :  { %1164 = vmatprep.subr.bf16.mxu0 %v1281_v15 }
  0x1f   :  { %1165 = vmatpush3.bf16.msra.mxu0 %v1282_v16 }
  0x22   :  { %303 = vmatmul.mubr.bf16.vlgmr.msra.gmra.mxu0 %v1283_v17  ;;  %v1307_v17 = vld [vmem:[%s1784_s4 + $0x78] sm:$0xff]  }
  0x23   :  { %310 = vmatprep.mubr.bf16.mxu0 %v1286_v18  ;;  %1214 = vmatprep.subr.bf16.mxu1 %v1307_v17 }
  0x2a   :  { %311 = vmatmul.mubr.bf16.gmra.mxu0 %v1288_v19 }
  0x2b   :  { %318 = vmatprep.mubr.bf16.mxu0 %v1289_v20 }
  0x32   :  { %319 = vmatmul.mubr.bf16.gmra.mxu0 %v1291_v21  ;;  %v1308_v21 = vld [vmem:[%s1784_s4 + $0x38] sm:$0xff]  }
  0x33   :  { %326 = vmatprep.mubr.bf16.mxu0 %v1292_v22  ;;  %1215 = vmatpush3.bf16.msra.mxu1 %v1308_v21  ;;  %v1412_v21 = vmov 0  }
  0x3a   :  { %327 = vmatmul.mubr.bf16.gmra.mxu0 %v1294_v23 }
  0x3b   :  { %334 = vmatprep.mubr.bf16.mxu0 %v1295_v24  ;;  %v1309_v24 = vld [vmem:[%s1784_s4 + $0x70] sm:$0xff]  }
  0x3c   :  { %1216 = vmatprep.subr.bf16.mxu1 %v1309_v24  ;;  %v688_v24 = vld [vmem:[%s1787_s1] sm:$0xf] }
  0x42   :  { %335 = vmatmul.mubr.bf16.gmra.mxu0 %v1297_v25 }
  0x43   :  { %342 = vmatprep.mubr.bf16.mxu0 %v1298_v26 }
  0x4a   :  { %343 = vmatmul.mubr.bf16.gmra.mxu0 %v1300_v27 }
  0x4b   :  { %350 = vmatprep.mubr.bf16.mxu0 %v1301_v28  ;;  %v1310_v28 = vld [vmem:[%s1784_s4 + $0x30] sm:$0xff]  }
  0x4c   :  { %1217 = vmatpush3.bf16.msra.mxu1 %v1310_v28  ;;  %v1334_v28 = vld [vmem:[%s1786_s6 + $0x54] ss:$8 sps:$4 sm:$0xff]  }
  0x52   :  { %351 = vmatmul.mubr.bf16.gmra.mxu0 %v1303_v29 }
  0x53   :  { %358 = vmatprep.mubr.bf16.mxu0 %v1304_v30 }
  0x5a   :  { %359 = vmatmul.mubr.bf16.gmra.mxu0 %v1306_v31 }
  0xe2   :  { %v1166_v32 = vpop.f32.mrf.mxu0 }
  0xe4   :  { %v1167_v34 = vpop.f32.mrf.mxu0 }
  0xe5   :  { %v1168_v35 = vadd.f32 %v1167_v34, %v1166_v32  ;;  %v1311_v32 = vld [vmem:[%s1784_s4 + $0x68] sm:$0xff]  }
  0xe6   :  { %v1169_v36 = vpop.f32.mrf.mxu0  ;;  %1218 = vmatprep.subr.bf16.mxu1 %v1311_v32  ;;  %v1340_v32 = vld [vmem:[%s1786_s6 + $0x34] ss:$8 sps:$4 sm:$0xff]  }
  0xe7   :  { %v305_v37 = vadd.f32 %v1168_v35, %v1572_v33 }
  0xe8   :  { %v1170_v38 = vpop.f32.mrf.mxu0 }
  0xe9   :  { %1366 = vtanh.f32 %v305_v37  ;;  %v1171_v39 = vadd.f32 %v1170_v38, %v1169_v36  ;;  %v1312_v36 = vld [vmem:[%s1784_s4 + $0x28] sm:$0xff]  }
  0xea   :  { %v1172_v40 = vpop.f32.mrf.mxu0  ;;  %1219 = vmatpush3.bf16.msra.mxu1 %v1312_v36  ;;  %v1097_v36 = vld [vmem:[%s1788_s5] ss:$0 sm:$0xff] }
  0xeb   :  { %v308_v41 = vadd.f32 %v1171_v39, %v1572_v33 }
  0xec   :  { %v1173_v42 = vpop.f32.mrf.mxu0 }
  0xed   :  { %1368 = vtanh.f32 %v308_v41  ;;  %v1174_v43 = vadd.f32 %v1173_v42, %v1172_v40  ;;  %v1313_v40 = vld [vmem:[%s1784_s4 + $0x60] sm:$0xff]  }
  0xee   :  { %v1175_v44 = vpop.f32.mrf.mxu0  ;;  %1220 = vmatprep.subr.bf16.mxu1 %v1313_v40 }
  0xef   :  { %v313_v45 = vadd.f32 %v1174_v43, %v1572_v33  ;;  %v1314_v43 = vld [vmem:[%s1784_s4 + $0x20] sm:$0xff]  }
  0xf0   :  { %v1176_v46 = vpop.f32.mrf.mxu0  ;;  %1221 = vmatpush3.bf16.msra.mxu1 %v1314_v43  ;;  %v1343_v43 = vld [vmem:[%s1786_s6 + $0x24] ss:$8 sps:$4 sm:$0xff]  }
  0xf1   :  { %1370 = vtanh.f32 %v313_v45  ;;  %v1177_v47 = vadd.f32 %v1176_v46, %v1175_v44 }
  0xf2   :  { %v1178_v48 = vpop.f32.mrf.mxu0 }
  0xf3   :  { %v316_v49 = vadd.f32 %v1177_v47, %v1572_v33  ;;  %v1315_v47 = vld [vmem:[%s1784_s4 + $0x58] sm:$0xff]  }
  0xf4   :  { %v1179_v50 = vpop.f32.mrf.mxu0  ;;  %1222 = vmatprep.subr.bf16.mxu1 %v1315_v47  ;;  %v1349_v47 = vld [vmem:[%s1786_s6 + $0x4] ss:$8 sps:$4 sm:$0xff]  }
  0xf5   :  { %1372 = vtanh.f32 %v316_v49  ;;  %v1180_v51 = vadd.f32 %v1179_v50, %v1178_v48  ;;  %v1316_v50 = vld [vmem:[%s1784_s4 + $0x18] sm:$0xff]  }
  0xf6   :  { %v1367_v52 = vpop.eup %1366  ;;  %v1181_v53 = vpop.f32.mrf.mxu0  ;;  %1223 = vmatpush3.bf16.msra.mxu1 %v1316_v50 }
  0xf7   :  { %v321_v54 = vadd.f32 %v1180_v51, %v1572_v33  ;;  %384 = vst.msk [vmem:[#allocation2] sm:$0xff] %vm383_vm0, %v1367_v52 }
  0xf8   :  { %v1182_v55 = vpop.f32.mrf.mxu0 }
  0xf9   :  { %1374 = vtanh.f32 %v321_v54  ;;  %v1183_v56 = vadd.f32 %v1182_v55, %v1181_v53  ;;  %v1317_v54 = vld [vmem:[%s1784_s4 + $0x50] sm:$0xff]  }
  0xfa   :  { %v1369_v57 = vpop.eup %1368  ;;  %v1184_v58 = vpop.f32.mrf.mxu0  ;;  %1224 = vmatprep.subr.bf16.mxu1 %v1317_v54  ;;  %v1351_v54 = vld [vmem:[%s1789_s9 + $0x38] sm:$0xff]  }
  0xfb   :  { %v324_v59 = vadd.f32 %v1183_v56, %v1572_v33  ;;  %386 = vrot.lane.b32.xlu0 %v1369_v57, %s1404_s0  ;;  %v1318_v56 = vld [vmem:[%s1784_s4 + $0x10] sm:$0xff]  }
  0xfc   :  { %v1185_v60 = vpop.f32.mrf.mxu0  ;;  %1225 = vmatpush3.bf16.msra.mxu1 %v1318_v56  ;;  %v1353_v56 = vld [vmem:[%s1789_s9 + $0x30] sm:$0xff]  }
  0xfd   :  { %1376 = vtanh.f32 %v324_v59  ;;  %v1186_v12 = vadd.f32 %v1185_v60, %v1184_v58  ;;  %v1319_v59 = vld [vmem:[%s1784_s4 + $0x48] sm:$0xff]   ;;  %v1321_v60 = vld [vmem:[%s1784_s4 + $0x40] sm:$0xff]  }
  0xfe   :  { %v1371_v61 = vpop.eup %1370  ;;  %v1187_v62 = vpop.f32.mrf.mxu0  ;;  %1226 = vmatprep.subr.bf16.mxu1 %v1319_v59  ;;  %v1356_v59 = vld [vmem:[%s1789_s9 + $0x60] sm:$0xff]  }
  0xff   :  { %392 = vrot.lane.b32.xlu1 %v1371_v61, %s1405_s3  ;;  %v329_v18 = vadd.f32 %v1186_v12, %v1572_v33 }
 0x100   :  { %v1188_v63 = vpop.f32.mrf.mxu0 }
 0x101   :  { %v1189_v19 = vadd.f32 %v1188_v63, %v1187_v62  ;;  %v1322_v62 = vld [vmem:[%s1784_s4] sm:$0xff]  }
 0x102   :  { %v1373_v0 = vpop.eup %1372  ;;  %v1190_v1 = vpop.f32.mrf.mxu0 }
 0x103   :  { %398 = vrot.lane.b32.xlu1 %v1373_v0, %s1406_s24  ;;  %v332_v26 = vadd.f32 %v1189_v19, %v1572_v33  ;;  %v1411_v19 = vmov 0.0  }
 0x104   :  { %v1191_v2 = vpop.f32.mrf.mxu0  ;;  %645 = vst [vmem:[#allocation4] sm:$0xff] %v1411_v19 }
 0x105   :  { %v1192_v3 = vadd.f32 %v1191_v2, %v1190_v1 }
 0x106   :  { %v1375_v4 = vpop.eup %1374  ;;  %v1193_v5 = vpop.f32.mrf.mxu0 }
 0x107   :  { %v337_v6 = vadd.f32 %v1192_v3, %v1572_v33  ;;  %404 = vrot.lane.b32.xlu1 %v1375_v4, %s1407_s25 }
 0x108   :  { %v1194_v7 = vpop.f32.mrf.mxu0 }
 0x109   :  { %1378 = vtanh.f32 %v337_v6  ;;  %v1195_v8 = vadd.f32 %v1194_v7, %v1193_v5 }
 0x10a   :  { %v1377_v9 = vpop.eup %1376  ;;  %v1196_v10 = vpop.f32.mrf.mxu0 }
 0x10b   :  { %v340_v11 = vadd.f32 %v1195_v8, %v1572_v33  ;;  %410 = vrot.lane.b32.xlu1 %v1377_v9, %s1408_s26 }
 0x10c   :  { %v1197_v13 = vpop.f32.mrf.mxu0 }
 0x10d   :  { %1380 = vtanh.f32 %v340_v11  ;;  %v1198_v14 = vadd.f32 %v1197_v13, %v1196_v10 }
 0x10e   :  { %v1199_v15 = vpop.f32.mrf.mxu0 }
 0x10f   :  { %v345_v16 = vadd.f32 %v1198_v14, %v1572_v33 }
 0x110   :  { %v1200_v20 = vpop.f32.mrf.mxu0 }
 0x111   :  { %1382 = vtanh.f32 %v345_v16  ;;  %v1201_v22 = vadd.f32 %v1200_v20, %v1199_v15  ;;  %v1323_v20 = vld [vmem:[%s1785_s7] ss:$8 sps:$4 sm:$0xff]  }
 0x112   :  { %v1202_v23 = vpop.f32.mrf.mxu0  ;;  %1384 = vtanh.f32 %v329_v18 }
 0x113   :  { %v348_v25 = vadd.f32 %v1201_v22, %v1572_v33  ;;  %v1325_v22 = vld [vmem:[%s1785_s7 + $0x4] ss:$8 sps:$4 sm:$0xff]  }
 0x114   :  { %v1203_v27 = vpop.f32.mrf.mxu0 }
 0x115   :  { %1386 = vtanh.f32 %v348_v25  ;;  %v1204_v29 = vadd.f32 %v1203_v27, %v1202_v23  ;;  %v1328_v23 = vld [vmem:[%s1786_s6 + $0x74] ss:$8 sps:$4 sm:$0xff]   ;;  %v1326_v25 = vld [vmem:[%s1786_s6 + $0x70] ss:$8 sps:$4 sm:$0xff]   ;;  %v1329_v27 = vld [vmem:[%s1786_s6 + $0x60] ss:$8 sps:$4 sm:$0xff]  }
 0x116   :  { %v1379_v30 = vpop.eup %1378  ;;  %v1205_v31 = vpop.f32.mrf.mxu0  ;;  %1388 = vtanh.f32 %v332_v26  ;;  %v1331_v26 = vld [vmem:[%s1786_s6 + $0x64] ss:$8 sps:$4 sm:$0xff]  }
 0x117   :  { %v353_v34 = vadd.f32 %v1204_v29, %v1572_v33  ;;  %427 = vst.msk [vmem:[#allocation2 + $0x8] sm:$0xff] %vm383_vm0, %v1379_v30  ;;  %v1332_v29 = vld [vmem:[%s1786_s6 + $0x50] ss:$8 sps:$4 sm:$0xff]   ;;  %v1337_v30 = vld [vmem:[%s1786_s6 + $0x44] ss:$8 sps:$4 sm:$0xff]  }
 0x118   :  { %v1206_v35 = vpop.f32.mrf.mxu0 }
 0x119   :  { %1390 = vtanh.f32 %v353_v34  ;;  %v1207_v37 = vadd.f32 %v1206_v35, %v1205_v31  ;;  %v1335_v31 = vld [vmem:[%s1786_s6 + $0x40] ss:$8 sps:$4 sm:$0xff]   ;;  %v1338_v34 = vld [vmem:[%s1786_s6 + $0x30] ss:$8 sps:$4 sm:$0xff]  }
 0x11a   :  { %v1381_v38 = vpop.eup %1380  ;;  %v1208_v39 = vpop.f32.mrf.mxu0 }
 0x11b   :  { %v356_v41 = vadd.f32 %v1207_v37, %v1572_v33  ;;  %429 = vrot.lane.b32.xlu0 %v1381_v38, %s1404_s0 }
 0x11c   :  { %v1209_v42 = vpop.f32.mrf.mxu0 }
 0x11d   :  { %1392 = vtanh.f32 %v356_v41  ;;  %v1210_v44 = vadd.f32 %v1209_v42, %v1208_v39  ;;  %v1341_v42 = vld [vmem:[%s1786_s6 + $0x20] ss:$8 sps:$4 sm:$0xff]  }
 0x11e   :  { %v1383_v45 = vpop.eup %1382  ;;  %v1211_v46 = vpop.f32.mrf.mxu0 }
 0x11f   :  { %v361_v48 = vadd.f32 %v1210_v44, %v1572_v33  ;;  %434 = vrot.lane.b32.xlu1 %v1383_v45, %s1405_s3  ;;  %v1385_v51 = vpop.eup %1384  ;;  %v1344_v45 = vld [vmem:[%s1786_s6 + $0x10] ss:$8 sps:$4 sm:$0xff]  }
 0x120   :  { %v1212_v49 = vpop.f32.mrf.mxu0 }
 0x121   :  { %1394 = vtanh.f32 %v361_v48  ;;  %v1213_v52 = vadd.f32 %v1212_v49, %v1211_v46  ;;  %v1346_v46 = vld [vmem:[%s1786_s6 + $0x14] ss:$8 sps:$4 sm:$0xff]   ;;  %v1347_v48 = vld [vmem:[%s1786_s6] ss:$8 sps:$4 sm:$0xff]  }
 0x122   :  { %v1387_v53 = vpop.eup %1386 }
 0x123   :  { %v364_v55 = vadd.f32 %v1213_v52, %v1572_v33  ;;  %416 = vrot.lane.b32.xlu1 %v1385_v51, %s1409_s12  ;;  %439 = vrot.lane.b32.xlu0 %v1387_v53, %s1406_s24  ;;  %v1389_v57 = vpop.eup %1388  ;;  %v1320_v33 = vld [vmem:[%s1784_s4 + $0x8] sm:$0xff]   ;;  %v1350_v53 = vld [vmem:[%s1789_s9 + $0x78] sm:$0xff]  }
 0x124   :  { %1227 = vmatpush3.bf16.msra.mxu1 %v1320_v33  ;;  %1236 = vmatprep.subr.bf16.mxu0 %v1350_v53  ;;  %v1357_v33 = vld [vmem:[%s1789_s9 + $0x20] sm:$0xff]  }
 0x125   :  { %1396 = vtanh.f32 %v364_v55  ;;  %1228 = vmatprep.subr.bf16.mxu1 %v1321_v60  ;;  %v1352_v55 = vld [vmem:[%s1789_s9 + $0x70] sm:$0xff]   ;;  %1237 = vmatpush3.bf16.msra.mxu0 %v1351_v54  ;;  %v1358_v60 = vld [vmem:[%s1789_s9 + $0x58] sm:$0xff]  }
 0x126   :  { %v1391_v58 = vpop.eup %1390  ;;  %1238 = vmatprep.subr.bf16.mxu0 %v1352_v55 }
 0x127   :  { %422 = vrot.lane.b32.xlu1 %v1389_v57, %s1410_s19  ;;  %444 = vrot.lane.b32.xlu0 %v1391_v58, %s1407_s25  ;;  %v1354_v57 = vld [vmem:[%s1789_s9 + $0x68] sm:$0xff]  }
 0x128   :  { %1229 = vmatpush3.bf16.msra.mxu1 %v1322_v62  ;;  %v1355_v58 = vld [vmem:[%s1789_s9 + $0x28] sm:$0xff]   ;;  %v1360_v62 = vld [vmem:[%s1789_s9 + $0x50] sm:$0xff]  }
 0x129   :  { %718 = vmatprep.subr.bf16.mxu1 %v1325_v22  ;;  %1239 = vmatpush3.bf16.msra.mxu0 %v1353_v56 }
 0x12a   :  { %v1393_v61 = vpop.eup %1392  ;;  %1240 = vmatprep.subr.bf16.mxu0 %v1354_v57 }
 0x12b   :  { %449 = vrot.lane.b32.xlu0 %v1393_v61, %s1408_s26  ;;  %v1359_v61 = vld [vmem:[%s1789_s9 + $0x18] sm:$0xff]  }
 0x12d   :  { %1241 = vmatpush3.bf16.msra.mxu0 %v1355_v58 }
 0x12e   :  { %v1395_v63 = vpop.eup %1394  ;;  %1242 = vmatprep.subr.bf16.mxu0 %v1356_v59 }
 0x12f   :  { %454 = vrot.lane.b32.xlu0 %v1395_v63, %s1409_s12 }
 0x131   :  { %1243 = vmatpush3.bf16.msra.mxu0 %v1357_v33 }
 0x132   :  { %v1397_v0 = vpop.eup %1396  ;;  %1244 = vmatprep.subr.bf16.mxu0 %v1358_v60 }
 0x133   :  { %459 = vrot.lane.b32.xlu0 %v1397_v0, %s1410_s19 }
 0x135   :  { %1245 = vmatpush3.bf16.msra.mxu0 %v1359_v61 }
 0x136   :  { %1246 = vmatprep.subr.bf16.mxu0 %v1360_v62 }
 0x16d   :  { %v387_v1 = vpop.permute.xlu0 %386 }
 0x16e   :  { %390 = vst.msk [vmem:[#allocation2] sm:$0xff] %vm389_vm1, %v387_v1 }
 0x171   :  { %v393_v2 = vpop.permute.xlu1 %392 }
 0x172   :  { %396 = vst.msk [vmem:[#allocation2] sm:$0xff] %vm395_vm2, %v393_v2 }
 0x175   :  { %v399_v3 = vpop.permute.xlu1 %398 }
 0x176   :  { %402 = vst.msk [vmem:[#allocation2] sm:$0xff] %vm401_vm3, %v399_v3 }
 0x179   :  { %v405_v4 = vpop.permute.xlu1 %404 }
 0x17a   :  { %408 = vst.msk [vmem:[#allocation2] sm:$0xff] %vm407_vm4, %v405_v4 }
 0x17d   :  { %v411_v5 = vpop.permute.xlu1 %410 }
 0x17e   :  { %414 = vst.msk [vmem:[#allocation2] sm:$0xff] %vm413_vm5, %v411_v5 }
 0x18d   :  { %v430_v6 = vpop.permute.xlu0 %429 }
 0x18e   :  { %432 = vst.msk [vmem:[#allocation2 + $0x8] sm:$0xff] %vm389_vm1, %v430_v6 }
 0x191   :  { %v435_v7 = vpop.permute.xlu1 %434 }
 0x192   :  { %437 = vst.msk [vmem:[#allocation2 + $0x8] sm:$0xff] %vm395_vm2, %v435_v7 }
 0x195   :  { %v417_v8 = vpop.permute.xlu1 %416  ;;  %v440_v9 = vpop.permute.xlu0 %439 }
 0x196   :  { %420 = vst.msk [vmem:[#allocation2] sm:$0xff] %vm419_vm6, %v417_v8  ;;  %v1361_v8 = vld [vmem:[%s1789_s9 + $0x10] sm:$0xff]  }
 0x197   :  { %442 = vst.msk [vmem:[#allocation2 + $0x8] sm:$0xff] %vm401_vm3, %v440_v9  ;;  %1247 = vmatpush3.bf16.msra.mxu0 %v1361_v8  ;;  %v1362_v9 = vld [vmem:[%s1789_s9 + $0x48] sm:$0xff]  }
 0x198   :  { %1248 = vmatprep.subr.bf16.mxu0 %v1362_v9 }
 0x199   :  { %v423_v10 = vpop.permute.xlu1 %422  ;;  %v445_v11 = vpop.permute.xlu0 %444 }
 0x19a   :  { %426 = vst.msk [vmem:[#allocation2] sm:$0xff] %vm425_vm7, %v423_v10  ;;  %v1363_v10 = vld [vmem:[%s1789_s9 + $0x8] sm:$0xff]  }
 0x19b   :  { %447 = vst.msk [vmem:[#allocation2 + $0x8] sm:$0xff] %vm407_vm4, %v445_v11  ;;  %1249 = vmatpush3.bf16.msra.mxu0 %v1363_v10  ;;  %v1364_v11 = vld [vmem:[%s1789_s9 + $0x40] sm:$0xff]  }
 0x19c   :  { %1250 = vmatprep.subr.bf16.mxu0 %v1364_v11 }
 0x19d   :  { %v450_v12 = vpop.permute.xlu0 %449 }
 0x19e   :  { %452 = vst.msk [vmem:[#allocation2 + $0x8] sm:$0xff] %vm413_vm5, %v450_v12  ;;  %v1365_v12 = vld [vmem:[%s1789_s9] sm:$0xff]  }
 0x19f   :  { %1251 = vmatpush3.bf16.msra.mxu0 %v1365_v12 }
 0x1a1   :  { %v455_v13 = vpop.permute.xlu0 %454  ;;  %v463_v15 = vld [vmem:[#allocation2] sm:$0xff] }
 0x1a2   :  { %457 = vst.msk [vmem:[#allocation2 + $0x8] sm:$0xff] %vm419_vm6, %v455_v13  ;;  %v465_v18 = vpack.c.bf16 %v463_v15, %v463_v15  ;;  %v868_v13 = vlaneseq }
 0x1a5   :  { %v460_v14 = vpop.permute.xlu0 %459 }
 0x1a6   :  { %462 = vst.msk [vmem:[#allocation2 + $0x8] sm:$0xff] %vm425_vm7, %v460_v14  ;;  %v869_v14 = vshrl.u32 %v868_v13, 7 }
 0x1a8   :  { %v870_v15 = vsub.s32 0, %v869_v14 }
 0x1ad   :  { %v464_v16 = vld [vmem:[#allocation2 + $0x8] sm:$0xff] }
 0x1ae   :  { %v466_v17 = vpack.c.bf16 %v464_v16, %v464_v16  ;;  %v866_v16 = vld [vmem:[%s1790_s8] sm:$0x3] }
 0x1b0   :  { %634 = vmatprep.mubr.bf16.mxu1 %v466_v17  ;;  %v874_v17 = vsub.s32 1, %v869_v14 }
 0x1b1   :  { %635 = vmatmul.mubr.bf16.vlgmr.msra.gmra.mxu1 %v465_v18  ;;  %v871_v18 = vrot.slane %v866_v16, %v870_v15 }
 0x1b2   :  { %736 = vmatprep.mubr.bf16.mxu1 %v1412_v21  ;;  %719 = vmatpush1.bf16.msra.mxu1 %v1323_v20 }
 0x1b3   :  { %825 = vmatprep.subr.bf16.mxu1 %v1328_v23 }
 0x1b9   :  { %1116 = vmatmul.mubr.msk.bf16.vlgmr.msra.gmra.mxu1 %vm383_vm0, %v688_v24 }
 0x1ba   :  { %826 = vmatpush1.bf16.msra.mxu1 %v1326_v25  ;;  %857 = vmatprep.mubr.bf16.mxu1 %v1412_v21  ;;  %v875_v21 = vrot.slane %v866_v16, %v874_v17 }
 0x1bb   :  { %827 = vmatprep.subr.bf16.mxu1 %v1331_v26 }
 0x1be   :  { %828 = vmatpush1.bf16.msra.mxu1 %v1329_v27 }
 0x1bf   :  { %829 = vmatprep.subr.bf16.mxu1 %v1334_v28 }
 0x1c2   :  { %830 = vmatpush1.bf16.msra.mxu1 %v1332_v29 }
 0x1c3   :  { %831 = vmatprep.subr.bf16.mxu1 %v1337_v30 }
 0x1c6   :  { %832 = vmatpush1.bf16.msra.mxu1 %v1335_v31 }
 0x1c7   :  { %833 = vmatprep.subr.bf16.mxu1 %v1340_v32 }
 0x1ca   :  { %834 = vmatpush1.bf16.msra.mxu1 %v1338_v34  ;;  %v1133_v34 = vld [vmem:[%s1791_s10] ss:$0 sm:$0xff] }
 0x1cb   :  { %835 = vmatprep.subr.bf16.mxu1 %v1343_v43 }
 0x1ce   :  { %836 = vmatpush1.bf16.msra.mxu1 %v1341_v42 }
 0x1cf   :  { %837 = vmatprep.subr.bf16.mxu1 %v1346_v46 }
 0x1d2   :  { %838 = vmatpush1.bf16.msra.mxu1 %v1344_v45 }
 0x1d3   :  { %839 = vmatprep.subr.bf16.mxu1 %v1349_v47 }
 0x1d6   :  { %840 = vmatpush1.bf16.msra.mxu1 %v1347_v48 }
 0x271   :  { %v1230_v35 = vpop.f32.mrf.mxu1 }
 0x273   :  { %v1231_v37 = vpop.f32.mrf.mxu1 }
 0x274   :  { %v1232_v38 = vadd.f32 %v1231_v37, %v1230_v35 }
 0x275   :  { %v1233_v39 = vpop.f32.mrf.mxu1 }
 0x276   :  { %v637_v40 = vadd.f32 %v1232_v38, %v1097_v36 }
 0x277   :  { %v1234_v41 = vpop.f32.mrf.mxu1 }
 0x278   :  { %1398 = vtanh.f32 %v637_v40 }
 0x279   :  { %v738_v63 = vpop.f32.mrf.mxu1 }
 0x27b   :  { %v740_v0 = vpop.f32.mrf.mxu1 }
 0x27d   :  { %v742_v1 = vpop.f32.mrf.mxu1 }
 0x27f   :  { %v743_v2 = vpop.f32.mrf.mxu1 }
 0x285   :  { %v1399_v44 = vpop.eup %1398 }
 0x286   :  { %644 = vst.msk [vmem:[#allocation3] sm:$0xff] %vm643_vm8, %v1399_v44 }
 0x28d   :  { %v656_v49 = vld [vmem:[#allocation3 + $0x4] sm:$0x3]  ;;  %v649_v50 = vld [vmem:[#allocation3 + $0x2] sm:$0x3]  ;;  %v646_v51 = vld [vmem:[#allocation3] sm:$0x3] }
 0x28e   :  { %658 = vrot.lane.b32.xlu1 %v656_v49, %s1407_s25  ;;  %651 = vrot.lane.b32.xlu0 %v649_v50, %s1405_s3  ;;  %v663_v52 = vld [vmem:[#allocation3 + $0x6] sm:$0x3]  ;;  %648 = vst.msk [vmem:[#allocation4] sm:$0x3] %vm647_vm9, %v646_v51 }
 0x292   :  { %665 = vrot.lane.b32.xlu0 %v663_v52, %s1409_s12 }
 0x300   :  { %v659_v3 = vpop.permute.xlu1 %658  ;;  %v652_v4 = vpop.permute.xlu0 %651 }
 0x301   :  { %655 = vst.msk [vmem:[#allocation4] sm:$0x3] %vm654_vm10, %v652_v4 }
 0x302   :  { %662 = vst.msk [vmem:[#allocation4] sm:$0x3] %vm661_vm11, %v659_v3 }
 0x304   :  { %v666_v5 = vpop.permute.xlu0 %665 }
 0x305   :  { %669 = vst.msk [vmem:[#allocation4] sm:$0x3] %vm668_vm12, %v666_v5 }
 0x30c   :  { %v670_v6 = vld [vmem:[#allocation4] sm:$0xff] }
 0x30d   :  { %v671_v7 = vpack.c.bf16 %v670_v6, %v670_v6 }
 0x30f   :  { %858 = vmatmul.mubr.bf16.vlgmr.msra.gmra.mxu1 %v671_v7 }
 0x3cf   :  { %v859_v19 = vpop.f32.mrf.mxu1 }
 0x3d0   :  { %v860_v20 = vadd.f32 %v859_v19, %v738_v63 }
 0x3d1   :  { %v861_v22 = vpop.f32.mrf.mxu1 }
 0x3d2   :  { %v878_v23 = vadd.f32 %v871_v18, %v860_v20  ;;  %v862_v24 = vadd.f32 %v861_v22, %v740_v0 }
 0x3d3   :  { %v863_v25 = vpop.f32.mrf.mxu1 }
 0x3d4   :  { %v879_v26 = vadd.f32 %v875_v21, %v862_v24  ;;  %1400 = vtanh.f32 %v878_v23 }
 0x3d5   :  { %v864_v27 = vpop.f32.mrf.mxu1 }
 0x3d6   :  { %1402 = vtanh.f32 %v879_v26 }
 0x3e1   :  { %v1401_v28 = vpop.eup %1400 }
 0x3e2   :  { %v882_v31 = vpack.c.bf16 %v1401_v28, %v1401_v28 }
 0x3e3   :  { %v1403_v29 = vpop.eup %1402 }
 0x3e4   :  { %v883_v30 = vpack.c.bf16 %v1403_v29, %v1403_v29 }
 0x3e6   :  { %1051 = vmatprep.mubr.bf16.mxu0 %v883_v30 }
 0x3e7   :  { %1052 = vmatmul.mubr.bf16.vlgmr.msra.gmra.mxu0 %v882_v31 }
 0x4a7   :  { %v1252_v32 = vpop.f32.mrf.mxu0 }
 0x4a9   :  { %v1253_v35 = vpop.f32.mrf.mxu0 }
 0x4aa   :  { %v1254_v36 = vadd.f32 %v1253_v35, %v1252_v32 }
 0x4ab   :  { %v1255_v37 = vpop.f32.mrf.mxu0 }
 0x4ac   :  { %v1054_v38 = vadd.f32 %v1254_v36, %v1133_v34 }
 0x4ad   :  { %v1256_v39 = vpop.f32.mrf.mxu0 }
 0x4ae   :  { %1059 = vst [vmem:[%s1792_s11] sm:$0xff] %v1054_v38 }

</bundles_post_ra>
